<compile_context>
chip_gen: v6e
topology: v6e:2x2x1
jax: 0.10.0
libtpu: 0.0.40
codegen_flags: <defaults>
</compile_context>

<pallas_src>
import math

import jax
import jax.numpy as jnp
from jax import lax
from jax.experimental import pallas as pl
from jax.experimental.pallas import tpu as pltpu


def _round_up(x, m):
    return ((x + m - 1) // m) * m


def _cdiv(a, b):
    return (a + b - 1) // b


def _maybe_pad2(a, rows, cols):
    r, c = a.shape
    if r == rows and c == cols:
        return a  # aligned (common case): no extra HBM read/write pass
    return jnp.pad(a, ((0, rows - r), (0, cols - c)))


def _vmem_budget_bytes():
    cap = 64 * 1024 * 1024
    try:
        info = pltpu.get_tpu_info()
        cap = int(getattr(info, "vmem_capacity_bytes", cap))
    except Exception:
        pass
    # ~half of physical VMEM: 64 MiB on v5e/v6e (128 MiB), 32 MiB on v7x (64 MiB).
    return max(cap // 2, 32 * 1024 * 1024)


def _vmem_footprint_bytes(tm, tn, tk, in_item, out_item, training):
    n_w = 2 if training else 1
    b = 2 * tm * tk * in_item                       # x (double-buffered)
    b += n_w * 2 * tn * tk * in_item                # weight_mu (+ weight_sigma)
    if training:
        b += 2 * tn * 128 * in_item                 # eps_out column (lane-padded)
        b += 2 * 8 * tk * in_item                   # eps_in row (sublane-padded)
    b += 2 * 8 * tn * 4                             # fused bias row (f32)
    b += 2 * tm * tn * out_item                     # output (double-buffered)
    b += tm * tn * 4                                # f32 accumulator scratch
    return b


def _noisy_linear_kernel(x_ref, wmu_ref, wsig_ref, eo_ref, ei_ref, b_ref,
                         o_ref, acc_ref):
    """Training: y = x @ (mu + sigma * (eps_out outer eps_in)).T + fused_bias."""
    k = pl.program_id(2)

    @pl.when(k == 0)
    def _():
        acc_ref[...] = jnp.zeros_like(acc_ref)

    # Rank-1 noise rebuilt on-chip from tiny vectors (VPU; hides under MXU).
    eps = eo_ref[...] * ei_ref[...]                         # (tn, 1)*(1, tk) -> (tn, tk)
    w = wmu_ref[...] + wsig_ref[...] * eps                  # (tn, tk)

    # Contract x's last dim against w's last dim; weight stays in (out, in) layout.
    # TODO(synk): confirm via pl.lower_as_mlir that this NT contraction emits no
    # per-K-step vxpose on v6e/v7x; if it does, pre-transpose params at init.
    acc_ref[...] += lax.dot_general(
        x_ref[...], w,
        dimension_numbers=(((1,), (1,)), ((), ())),
        preferred_element_type=jnp.float32)

    @pl.when(k == pl.num_programs(2) - 1)
    def _():
        o_ref[...] = (acc_ref[...] + b_ref[...]).astype(o_ref.dtype)


def _linear_kernel(x_ref, wmu_ref, b_ref, o_ref, acc_ref):
    """Eval: y = x @ mu.T + bias_mu (sigma/epsilon never touch HBM/VMEM)."""
    k = pl.program_id(2)

    @pl.when(k == 0)
    def _():
        acc_ref[...] = jnp.zeros_like(acc_ref)

    acc_ref[...] += lax.dot_general(
        x_ref[...], wmu_ref[...],
        dimension_numbers=(((1,), (1,)), ((), ())),
        preferred_element_type=jnp.float32)

    @pl.when(k == pl.num_programs(2) - 1)
    def _():
        o_ref[...] = (acc_ref[...] + b_ref[...]).astype(o_ref.dtype)


def noisy_linear(x, weight_mu, weight_sigma, bias_mu, bias_sigma,
                 eps_in, eps_out, *, training=True, stream_dtype=None,
                 tm=256, tn=512, tk=1024):
    """Pallas NoisyLinear.forward with factorized noise.

    training: y = x @ (weight_mu + weight_sigma * outer(eps_out, eps_in)).T
                  + (bias_mu + bias_sigma * eps_out)
    eval:     y = x @ weight_mu.T + bias_mu
    """
    B, in_f = x.shape
    out_f = weight_mu.shape[0]
    out_dtype = x.dtype

    s_dtype = jnp.dtype(stream_dtype) if stream_dtype is not None else jnp.dtype(x.dtype)
    in_item = s_dtype.itemsize
    out_item = jnp.dtype(out_dtype).itemsize
    m_align = 16 if in_item < 4 else 8      # bf16 packs 2 rows per sublane

    # Clamp tiles to the aligned problem size (tiny RL heads don't pay for big blocks).
    tm = min(tm, _round_up(B, m_align))
    tn = min(tn, _round_up(out_f, 128))
    tk = min(tk, _round_up(in_f, 128))

    # v7x megacore: keep >= 2 parallel (M, N) blocks when out_f permits, otherwise
    # the second TensorCore idles on a (1, 1, K) grid.
    np0 = _round_up(out_f, 128)
    if _cdiv(_round_up(B, m_align), tm) * _cdiv(np0, tn) < 2 and np0 >= 256:
        tn = 128 * _cdiv(np0 // 128, 2)

    # Fit the double-buffered working set into the per-generation VMEM budget,
    # shrinking K first, then N, then M (weight traffic scales with #M-blocks).
    budget = _vmem_budget_bytes()
    while _vmem_footprint_bytes(tm, tn, tk, in_item, out_item, training) > budget:
        if tk > 128:
            tk = 128 * max(1, (tk // 128) // 2)
        elif tn > 128:
            tn = 128 * max(1, (tn // 128) // 2)
        elif tm > m_align:
            tm = max(m_align, tm // 2)
        else:
            break

    Mp = _round_up(B, tm)
    Np = _round_up(out_f, tn)
    Kp = _round_up(in_f, tk)
    grid = (Mp // tm, Np // tn, Kp // tk)

    cast = (lambda a: a.astype(s_dtype)) if stream_dtype is not None else (lambda a: a)

    xp = _maybe_pad2(cast(x), Mp, Kp)
    wmu_p = _maybe_pad2(cast(weight_mu), Np, Kp)

    x_spec = pl.BlockSpec((tm, tk), lambda i, j, k: (i, k))
    w_spec = pl.BlockSpec((tn, tk), lambda i, j, k: (j, k))
    row_spec = pl.BlockSpec((1, tn), lambda i, j, k: (0, j))
    o_spec = pl.BlockSpec((tm, tn), lambda i, j, k: (i, j))

    if training:
        wsig_p = _maybe_pad2(cast(weight_sigma), Np, Kp)
        eo_p = _maybe_pad2(cast(eps_out).reshape(out_f, 1), Np, 1)   # (Np, 1) column
        ei_p = _maybe_pad2(cast(eps_in).reshape(1, in_f), 1, Kp)     # (1, Kp) row
        # Bias fused in the wrapper (O(out_f)) -> a single bias ref in the kernel.
        bias = (bias_mu + bias_sigma * eps_out).astype(jnp.float32)
        b_p = _maybe_pad2(bias.reshape(1, out_f), 1, Np)
        kernel = _noisy_linear_kernel
        in_specs = [x_spec, w_spec, w_spec,
                    pl.BlockSpec((tn, 1), lambda i, j, k: (j, 0)),
                    pl.BlockSpec((1, tk), lambda i, j, k: (0, k)),
                    row_spec]
        args = (xp, wmu_p, wsig_p, eo_p, ei_p, b_p)
        n_w = 2
        fuse_flops = grid[0] * 3 * Np * Kp       # eps outer + sigma*eps + add, per M block
    else:
        b_p = _maybe_pad2(bias_mu.astype(jnp.float32).reshape(1, out_f), 1, Np)
        kernel = _linear_kernel
        in_specs = [x_spec, w_spec, row_spec]
        args = (xp, wmu_p, b_p)
        n_w = 1
        fuse_flops = 0

    cost = pl.CostEstimate(
        flops=int(2 * Mp * Np * Kp + fuse_flops),
        transcendentals=0,
        bytes_accessed=int(in_item * (grid[1] * Mp * Kp          # x per N block
                                      + grid[0] * n_w * Np * Kp)  # weights per M block
                           + out_item * Mp * Np + 4 * Np))

    out_p = pl.pallas_call(
        kernel,
        out_shape=jax.ShapeDtypeStruct((Mp, Np), out_dtype),
        grid_spec=pltpu.PrefetchScalarGridSpec(
            num_scalar_prefetch=0,
            grid=grid,
            in_specs=in_specs,
            out_specs=o_spec,
            scratch_shapes=[pltpu.VMEM((tm, tn), jnp.float32)]),
        compiler_params=pltpu.CompilerParams(
            dimension_semantics=("parallel", "parallel", "arbitrary"),
            vmem_limit_bytes=int(budget)),
        cost_estimate=cost,
    )(*args)

    if Mp == B and Np == out_f:
        return out_p
    return out_p[:B, :out_f]


def init_noisy_linear_params(key, in_features, out_features, sigma_init=0.017):
    """reset_parameters() + reset_noise(), keeping the noise in factorized form.

    weight_epsilon of the PyTorch module == outer(eps_out, eps_in);
    bias_epsilon == eps_out.
    """
    k_wmu, k_bmu, k_ein, k_eout = jax.random.split(key, 4)
    mu_range = 1.0 / math.sqrt(in_features)

    weight_mu = jax.random.uniform(
        k_wmu, (out_features, in_features), jnp.float32, -mu_range, mu_range)
    bias_mu = jax.random.uniform(
        k_bmu, (out_features,), jnp.float32, -mu_range, mu_range)
    weight_sigma = jnp.full((out_features, in_features), sigma_init, jnp.float32)
    bias_sigma = jnp.full((out_features,), sigma_init, jnp.float32)

    def scale_noise(k, size):
        v = jax.random.normal(k, (size,), jnp.float32)
        return jnp.sign(v) * jnp.sqrt(jnp.abs(v))

    eps_in = scale_noise(k_ein, in_features)
    eps_out = scale_noise(k_eout, out_features)

    return dict(weight_mu=weight_mu, weight_sigma=weight_sigma,
                bias_mu=bias_mu, bias_sigma=bias_sigma,
                eps_in=eps_in, eps_out=eps_out)


if __name__ == "__main__":
    key = jax.random.PRNGKey(0)
    k_params, k_x = jax.random.split(key)

    batch, in_features, out_features = 8, 32, 16
    p = init_noisy_linear_params(k_params, in_features, out_features)
    x = jax.random.normal(k_x, (batch, in_features), jnp.float32)

    # Dense reference exactly matching the PyTorch module's forward.
    w_eps = jnp.outer(p["eps_out"], p["eps_in"])                 # weight_epsilon
    w_ref = p["weight_mu"] + p["weight_sigma"] * w_eps
    b_ref = p["bias_mu"] + p["bias_sigma"] * p["eps_out"]        # bias_epsilon == eps_out
    y_train_ref = x @ w_ref.T + b_ref
    y_eval_ref = x @ p["weight_mu"].T + p["bias_mu"]

    # Training path (noisy weights, rank-1 epsilon streamed as two vectors).
    y = noisy_linear(x, p["weight_mu"], p["weight_sigma"], p["bias_mu"],
                     p["bias_sigma"], p["eps_in"], p["eps_out"], training=True)
    jax.block_until_ready(y)
    assert y.shape == (batch, out_features)
    assert jnp.allclose(y, y_train_ref, atol=1e-5, rtol=1e-5), "training-path mismatch"

    # Eval path (plain linear; noise tensors never reach the kernel).
    y_eval = noisy_linear(x, p["weight_mu"], p["weight_sigma"], p["bias_mu"],
                          p["bias_sigma"], p["eps_in"], p["eps_out"], training=False)
    jax.block_until_ready(y_eval)
    assert jnp.allclose(y_eval, y_eval_ref, atol=1e-5, rtol=1e-5), "eval-path mismatch"

    # bf16-streaming perf mode (f32 accumulate) — looser tolerance by design.
    y_bf16 = noisy_linear(x, p["weight_mu"], p["weight_sigma"], p["bias_mu"],
                          p["bias_sigma"], p["eps_in"], p["eps_out"],
                          training=True, stream_dtype=jnp.bfloat16)
    jax.block_until_ready(y_bf16)
    assert jnp.allclose(y_bf16, y_train_ref, atol=5e-2, rtol=5e-2), "bf16-path mismatch"

    print("KERNEL_OK")
</pallas_src>

<mosaic_0001>
module attributes {stable_mosaic.version = 11 : i64} {
  func.func @_noisy_linear_kernel(%arg0: i32, %arg1: i32, %arg2: i32, %arg3: memref<8x128xf32, #tpu.memory_space<vmem>>, %arg4: memref<128x128xf32, #tpu.memory_space<vmem>>, %arg5: memref<128x128xf32, #tpu.memory_space<vmem>>, %arg6: memref<128x1xf32, #tpu.memory_space<vmem>>, %arg7: memref<1x128xf32, #tpu.memory_space<vmem>>, %arg8: memref<1x128xf32, #tpu.memory_space<vmem>>, %arg9: memref<8x128xf32, #tpu.memory_space<vmem>>, %arg10: memref<8x128xf32, #tpu.memory_space<vmem>>) attributes {dimension_semantics = [#tpu.dimension_semantics<parallel>, #tpu.dimension_semantics<parallel>, #tpu.dimension_semantics<arbitrary>], iteration_bounds = array<i64: 1, 1, 1>, scalar_prefetch = 0 : i64, scratch_operands = 1 : i64, tpu.core_type = #tpu.core_type<tc>, window_params = [{transform_indices = @transform_0, window_bounds = array<i64: 8, 128>}, {transform_indices = @transform_1, window_bounds = array<i64: 128, 128>}, {transform_indices = @transform_2, window_bounds = array<i64: 128, 128>}, {transform_indices = @transform_3, window_bounds = array<i64: 128, 1>}, {transform_indices = @transform_4, window_bounds = array<i64: 1, 128>}, {transform_indices = @transform_5, window_bounds = array<i64: 1, 128>}, {transform_indices = @transform_6, window_bounds = array<i64: 8, 128>}]} {
    %c0_i32 = arith.constant 0 : i32
    %0 = arith.cmpi eq, %arg2, %c0_i32 : i32
    %1 = arith.extui %0 : i1 to i32
    %c0_i32_0 = arith.constant 0 : i32
    %2 = arith.cmpi ne, %1, %c0_i32_0 : i32
    scf.if %2 {
      %cst_16 = arith.constant 0.000000e+00 : f32
      %20 = vector.broadcast %cst_16 : f32 to vector<8x128xf32>
      %c0_17 = arith.constant 0 : index
      %c0_18 = arith.constant 0 : index
      %21 = vector.load %arg10[%c0_17, %c0_18] : memref<8x128xf32, #tpu.memory_space<vmem>>, vector<8x128xf32>
      tpu.vector_store %arg10[%c0_17, %c0_18], %20 {strides = array<i32>} : memref<8x128xf32, #tpu.memory_space<vmem>>, vector<8x128xf32>,
    } else {
    }
    %c0 = arith.constant 0 : index
    %c0_1 = arith.constant 0 : index
    %3 = vector.load %arg6[%c0, %c0_1] : memref<128x1xf32, #tpu.memory_space<vmem>>, vector<128x1xf32>
    %c0_2 = arith.constant 0 : index
    %c0_3 = arith.constant 0 : index
    %4 = vector.load %arg7[%c0_2, %c0_3] : memref<1x128xf32, #tpu.memory_space<vmem>>, vector<1x128xf32>
    %5 = vector.broadcast %3 : vector<128x1xf32> to vector<128x128xf32>
    %6 = vector.broadcast %4 : vector<1x128xf32> to vector<128x128xf32>
    %7 = arith.mulf %5, %6 : vector<128x128xf32>
    %c0_4 = arith.constant 0 : index
    %c0_5 = arith.constant 0 : index
    %8 = vector.load %arg4[%c0_4, %c0_5] : memref<128x128xf32, #tpu.memory_space<vmem>>, vector<128x128xf32>
    %c0_6 = arith.constant 0 : index
    %c0_7 = arith.constant 0 : index
    %9 = vector.load %arg5[%c0_6, %c0_7] : memref<128x128xf32, #tpu.memory_space<vmem>>, vector<128x128xf32>
    %10 = arith.mulf %9, %7 : vector<128x128xf32>
    %11 = arith.addf %8, %10 : vector<128x128xf32>
    %c0_8 = arith.constant 0 : index
    %c0_9 = arith.constant 0 : index
    %12 = vector.load %arg10[%c0_8, %c0_9] : memref<8x128xf32, #tpu.memory_space<vmem>>, vector<8x128xf32>
    %c0_10 = arith.constant 0 : index
    %c0_11 = arith.constant 0 : index
    %13 = vector.load %arg3[%c0_10, %c0_11] : memref<8x128xf32, #tpu.memory_space<vmem>>, vector<8x128xf32>
    %cst = arith.constant dense<0.000000e+00> : vector<8x128xf32>
    %14 = tpu.matmul %13, %11, %cst {dimension_numbers = #tpu.dot_dimension_numbers<[1], [1], [0], [0], [0, 0, 1, 0], [], []>} : vector<8x128xf32>, vector<128x128xf32>, vector<8x128xf32> -> vector<8x128xf32>
    %15 = arith.addf %12, %14 : vector<8x128xf32>
    %c0_12 = arith.constant 0 : index
    %c0_13 = arith.constant 0 : index
    %16 = vector.load %arg10[%c0_12, %c0_13] : memref<8x128xf32, #tpu.memory_space<vmem>>, vector<8x128xf32>
    tpu.vector_store %arg10[%c0_12, %c0_13], %15 {strides = array<i32>} : memref<8x128xf32, #tpu.memory_space<vmem>>, vector<8x128xf32>,
    %c0_i32_14 = arith.constant 0 : i32
    %17 = arith.cmpi eq, %arg2, %c0_i32_14 : i32
    %18 = arith.extui %17 : i1 to i32
    %c0_i32_15 = arith.constant 0 : i32
    %19 = arith.cmpi ne, %18, %c0_i32_15 : i32
    scf.if %19 {
      %c0_16 = arith.constant 0 : index
      %c0_17 = arith.constant 0 : index
      %20 = vector.load %arg10[%c0_16, %c0_17] : memref<8x128xf32, #tpu.memory_space<vmem>>, vector<8x128xf32>
      %c0_18 = arith.constant 0 : index
      %c0_19 = arith.constant 0 : index
      %21 = vector.load %arg8[%c0_18, %c0_19] : memref<1x128xf32, #tpu.memory_space<vmem>>, vector<1x128xf32>
      %22 = vector.broadcast %21 : vector<1x128xf32> to vector<8x128xf32>
      %23 = arith.addf %20, %22 : vector<8x128xf32>
      %c0_20 = arith.constant 0 : index
      %c0_21 = arith.constant 0 : index
      %24 = vector.load %arg9[%c0_20, %c0_21] : memref<8x128xf32, #tpu.memory_space<vmem>>, vector<8x128xf32>
      tpu.vector_store %arg9[%c0_20, %c0_21], %23 {strides = array<i32>} : memref<8x128xf32, #tpu.memory_space<vmem>>, vector<8x128xf32>,
    } else {
    }
    return
  }
  func.func @transform_0(%arg0: i32, %arg1: i32, %arg2: i32) -> (i32, i32) {
    %c0_i32 = arith.constant 0 : i32
    return %arg0, %arg2 : i32, i32
  }
  func.func @transform_1(%arg0: i32, %arg1: i32, %arg2: i32) -> (i32, i32) {
    %c0_i32 = arith.constant 0 : i32
    return %arg1, %arg2 : i32, i32
  }
  func.func @transform_2(%arg0: i32, %arg1: i32, %arg2: i32) -> (i32, i32) {
    %c0_i32 = arith.constant 0 : i32
    return %arg1, %arg2 : i32, i32
  }
  func.func @transform_3(%arg0: i32, %arg1: i32, %arg2: i32) -> (i32, i32) {
    %c0_i32 = arith.constant 0 : i32
    %c0_i32_0 = arith.constant 0 : i32
    return %arg1, %c0_i32 : i32, i32
  }
  func.func @transform_4(%arg0: i32, %arg1: i32, %arg2: i32) -> (i32, i32) {
    %c0_i32 = arith.constant 0 : i32
    %c0_i32_0 = arith.constant 0 : i32
    return %c0_i32, %arg2 : i32, i32
  }
  func.func @transform_5(%arg0: i32, %arg1: i32, %arg2: i32) -> (i32, i32) {
    %c0_i32 = arith.constant 0 : i32
    %c0_i32_0 = arith.constant 0 : i32
    return %c0_i32, %arg1 : i32, i32
  }
  func.func @transform_6(%arg0: i32, %arg1: i32, %arg2: i32) -> (i32, i32) {
    %c0_i32 = arith.constant 0 : i32
    return %arg0, %arg1 : i32, i32
  }
}

</mosaic_0001>

<bundles_post_ra>
// kernel: tpu_custom_call.1
= control target key start
LH: loop header
LB: loop body
LE: loop exit
PB: predicated region body
PF: predicated region fallthrough
CT: control target
= control target key end

     0   :  { %11 = vsyncpa [#allocation4], 0  ;;  %s660_s0 = inlined_call_operand.hbm [shape: f32[8,128], index: 0, kind: input, shape index: {}]   ;;  %s661_s1 = inlined_call_operand.vmem [shape: f32[128,128], index: 1, kind: input, shape index: {}]   ;;  %s662_s2 = inlined_call_operand.hbm [shape: f32[128,128], index: 2, kind: input, shape index: {}]   ;;  %s663_s3 = inlined_call_operand.vmem [shape: f32[128,1], index: 3, kind: input, shape index: {}]   ;;  %s664_s4 = inlined_call_operand.vmem [shape: f32[1,128], index: 4, kind: input, shape index: {}]   ;;  %s665_s5 = inlined_call_operand.vmem [shape: f32[1,128], index: 5, kind: input, shape index: {}]   ;;  %s666_s6 = inlined_call_operand.hbm [shape: f32[8,128], index: 6, kind: output, shape index: {}]  }
   0x1   :  { %12 = vsyncpa [#allocation7], 0 }
   0x2   :  { %13 = vsyncpa [#allocation5], 0  ;;  %s471_s21 = smov [#allocation3]   ;;  %s472_s23 = smov [#allocation6]  }
   0x3   :  { %s20_s22 = sshll.u32 %s471_s21, 4  ;;  %s31_s24 = sshll.u32 %s472_s23, 4  ;;  %s21_s22 = int_to_ptr.vmem [resolvable:$true] %s20_s22  ;;  %s32_s24 = int_to_ptr.vmem [resolvable:$true] %s31_s24 }
   0x4   :  { %s413_s25 = scalar_lea.vmem %s21_s22, 128  ;;  %p418_p1 = scmp.lt.s32.totalorder %s21_s22, %s21_s22 }
   0x5   :  { %p414_p0 = scmp.ne.s32.totalorder %s21_s22, %s413_s25  ;;  %p419_p2 = scmp.lt.s32.totalorder %s413_s25, %s413_s25 }
   0x7   :  { %p420_p3 = por %p419_p2, %p418_p1 }
   0x9   :  { %p421_p4 = pnand %p420_p3, %p414_p0 }
   0xb   :  { %424 = shalt.err (!%p421_p4)
}
   0xc   :  { %23 = dma.hbm_to_vmem [thread:$0]  %s660_s0, 128, %s21_s22, [#allocation4]  }
   0xd   :  { %s433_s28 = scalar_lea.vmem %s32_s24, 2048  ;;  %p438_p6 = scmp.lt.s32.totalorder %s32_s24, %s32_s24 }
   0xe   :  { %p434_p5 = scmp.ne.s32.totalorder %s32_s24, %s433_s28  ;;  %p439_p7 = scmp.lt.s32.totalorder %s433_s28, %s433_s28 }
  0x10   :  { %p440_p8 = por %p439_p7, %p438_p6 }
  0x12   :  { %p441_p9 = pnand %p440_p8, %p434_p5 }
  0x14   :  { %444 = shalt.err (!%p441_p9)
}
  0x15   :  { %s473_s29 = smov 128   ;;  %s474_s30 = smov 8  }
  0x16   :  { %37 = dma.hbm_to_vmem [thread:$0]  %s662_s2, 2048, %s32_s24, [#allocation7], %s473_s29, %s473_s29, %s474_s30  }
  0x17   :  { %465 = dma.done.wait [#allocation4], 128  }
  0x18   :  { %466 = vsyncadd [#allocation4], 4294967168 }
  0x19   :  { %467 = dma.done.wait [#allocation7], 2048  }
  0x1a   :  { %468 = vsyncadd [#allocation7], 4294965248  ;;  %v475_v0 = vmov 0   ;;  %v70_v1 = vld [vmem:[%s663_s3 + $0x78] sm:$0xff]  ;;  %v68_v2 = vld [vmem:[%s663_s3 + $0x68] sm:$0xff]  ;;  %v476_v5 = vmov 0.0  }
  0x1b   :  { %404 = vset.pattern.permute.xlu1 %v475_v0  ;;  %403 = vset.pattern.permute.xlu0 %v475_v0  ;;  %v69_v3 = vld [vmem:[%s663_s3 + $0x70] sm:$0xff]  ;;  %v67_v4 = vld [vmem:[%s663_s3 + $0x60] sm:$0xff]  ;;  %v66_v6 = vld [vmem:[%s663_s3 + $0x58] sm:$0xff]  ;;  %vm477_vm0 = vmmov 0   ;;  %s478_s19 = smov [#allocation8]  }
  0x1c   :  { %149 = vperm.xlu0 %403, %v70_v1   ;;  %139 = vperm.xlu1 %404, %v68_v2   ;;  %v65_v7 = vld [vmem:[%s663_s3 + $0x50] sm:$0xff]  ;;  %v64_v8 = vld [vmem:[%s663_s3 + $0x48] sm:$0xff]  ;;  %v63_v9 = vld [vmem:[%s663_s3 + $0x40] sm:$0xff]  ;;  %s331_s20 = sshll.u32 %s478_s19, 4  ;;  %s332_s20 = int_to_ptr.vmem [resolvable:$true] %s331_s20 }
  0x1d   :  { %360 = vmatprep.subr.mxu0 %v476_v5  ;;  %v62_v10 = vld [vmem:[%s663_s3 + $0x38] sm:$0xff]  ;;  %v61_v11 = vld [vmem:[%s663_s3 + $0x30] sm:$0xff]  ;;  %v60_v12 = vld [vmem:[%s663_s3 + $0x28] sm:$0xff]  ;;  %392 = vmatprep.mubr.msk.f32.mxu0 %vm477_vm0, %v476_v5  ;;  %s445_s21 = scalar_lea.vmem %s332_s20, 128  ;;  %p450_p11 = scmp.lt.s32.totalorder %s332_s20, %s332_s20 }
  0x1e   :  { %v59_v13 = vld [vmem:[%s663_s3 + $0x20] sm:$0xff]  ;;  %v58_v14 = vld [vmem:[%s663_s3 + $0x18] sm:$0xff]  ;;  %v57_v15 = vld [vmem:[%s663_s3 + $0x10] sm:$0xff]  ;;  %p446_p10 = scmp.ne.s32.totalorder %s332_s20, %s445_s21  ;;  %p451_p12 = scmp.lt.s32.totalorder %s445_s21, %s445_s21 }
  0x1f   :  { %v56_v16 = vld [vmem:[%s663_s3 + $0x8] sm:$0xff]  ;;  %v55_v17 = vld [vmem:[%s663_s3] sm:$0xff]  ;;  %v189_v23 = vld [vmem:[%s661_s1 + $0x78] sm:$0xff] }
  0x20   :  { %144 = vperm.xlu0 %403, %v69_v3   ;;  %134 = vperm.xlu1 %404, %v67_v4   ;;  %v573_v18 = vld [vmem:[%s664_s4] ss:$0 sm:$0xff]  ;;  %v203_v26 = vld [vmem:[#allocation6 + $0x68] sm:$0xff]  ;;  %v204_v27 = vld [vmem:[#allocation6 + $0x70] sm:$0xff]  ;;  %p452_p13 = por %p451_p12, %p450_p11 }
  0x21   :  { %v205_v19 = vld [vmem:[#allocation6 + $0x78] sm:$0xff]  ;;  %v188_v31 = vld [vmem:[%s661_s1 + $0x70] sm:$0xff]  ;;  %v187_v35 = vld [vmem:[%s661_s1 + $0x68] sm:$0xff] }
  0x22   :  { %v202_v38 = vld [vmem:[#allocation6 + $0x60] sm:$0xff]  ;;  %v201_v43 = vld [vmem:[#allocation6 + $0x58] sm:$0xff]  ;;  %v200_v49 = vld [vmem:[#allocation6 + $0x50] sm:$0xff]  ;;  %p453_p0 = pnand %p452_p13, %p446_p10 }
  0x23   :  { %v186_v45 = vld [vmem:[%s661_s1 + $0x60] sm:$0xff]  ;;  %v185_v51 = vld [vmem:[%s661_s1 + $0x58] sm:$0xff]  ;;  %v199_v55 = vld [vmem:[#allocation6 + $0x48] sm:$0xff] }
  0x24   :  { %129 = vperm.xlu0 %403, %v66_v6   ;;  %124 = vperm.xlu1 %404, %v65_v7   ;;  %v184_v57 = vld [vmem:[%s661_s1 + $0x50] sm:$0xff]  ;;  %v198_v61 = vld [vmem:[#allocation6 + $0x40] sm:$0xff]  ;;  %v197_v3 = vld [vmem:[#allocation6 + $0x38] sm:$0xff] }
  0x25   :  { %v183_v63 = vld [vmem:[%s661_s1 + $0x48] sm:$0xff]  ;;  %v182_v6 = vld [vmem:[%s661_s1 + $0x40] sm:$0xff] }
  0x28   :  { %119 = vperm.xlu0 %403, %v64_v8   ;;  %114 = vperm.xlu1 %404, %v63_v9  }
  0x2c   :  { %109 = vperm.xlu0 %403, %v62_v10   ;;  %104 = vperm.xlu1 %404, %v61_v11   ;;  %v196_v10 = vld [vmem:[#allocation6 + $0x30] sm:$0xff] }
  0x30   :  { %99 = vperm.xlu0 %403, %v60_v12   ;;  %94 = vperm.xlu1 %404, %v59_v13   ;;  %v181_v12 = vld [vmem:[%s661_s1 + $0x38] sm:$0xff] }
  0x34   :  { %89 = vperm.xlu0 %403, %v58_v14   ;;  %84 = vperm.xlu1 %404, %v57_v15  }
  0x38   :  { %79 = vperm.xlu0 %403, %v56_v16   ;;  %74 = vperm.xlu1 %404, %v55_v17   ;;  %v195_v16 = vld [vmem:[#allocation6 + $0x28] sm:$0xff] }
  0x97   :  { %v150_v20 = vpop.permute.xlu0 %149  ;;  %v140_v22 = vpop.permute.xlu1 %139 }
  0x98   :  { %v173_v21 = vmul.f32 %v573_v18, %v150_v20  ;;  %v171_v25 = vmul.f32 %v573_v18, %v140_v22 }
  0x9a   :  { %v221_v24 = vmul.f32 %v205_v19, %v173_v21  ;;  %v219_v32 = vmul.f32 %v203_v26, %v171_v25  ;;  %v180_v19 = vld [vmem:[%s661_s1 + $0x30] sm:$0xff]  ;;  %v179_v25 = vld [vmem:[%s661_s1 + $0x28] sm:$0xff] }
  0x9b   :  { %v145_v28 = vpop.permute.xlu0 %144  ;;  %v135_v34 = vpop.permute.xlu1 %134 }
  0x9c   :  { %v172_v29 = vmul.f32 %v573_v18, %v145_v28  ;;  %v237_v30 = vadd.f32 %v221_v24, %v189_v23  ;;  %v170_v36 = vmul.f32 %v573_v18, %v135_v34  ;;  %v235_v40 = vadd.f32 %v219_v32, %v187_v35  ;;  %v194_v23 = vld [vmem:[#allocation6 + $0x20] sm:$0xff]  ;;  %v192_v35 = vld [vmem:[#allocation6 + $0x10] sm:$0xff] }
  0x9e   :  { %v220_v33 = vmul.f32 %v204_v27, %v172_v29  ;;  %361 = vmatpush3.xpose.msra.mxu0 %v237_v30  ;;  %v218_v41 = vmul.f32 %v202_v38, %v170_v36  ;;  %v193_v29 = vld [vmem:[#allocation6 + $0x18] sm:$0xff] }
  0x9f   :  { %362 = vmatprep.subr.mxu0 %v476_v5  ;;  %v130_v39 = vpop.permute.xlu0 %129  ;;  %v125_v44 = vpop.permute.xlu1 %124 }
  0xa0   :  { %v236_v37 = vadd.f32 %v220_v33, %v188_v31  ;;  %v169_v42 = vmul.f32 %v573_v18, %v130_v39  ;;  %v168_v47 = vmul.f32 %v573_v18, %v125_v44  ;;  %v234_v48 = vadd.f32 %v218_v41, %v186_v45  ;;  %v178_v31 = vld [vmem:[%s661_s1 + $0x20] sm:$0xff]  ;;  %v191_v41 = vld [vmem:[#allocation6 + $0x8] sm:$0xff] }
  0xa2   :  { %363 = vmatpush3.xpose.msra.mxu0 %v236_v37  ;;  %v217_v46 = vmul.f32 %v201_v43, %v169_v42  ;;  %v216_v52 = vmul.f32 %v200_v49, %v168_v47  ;;  %v177_v37 = vld [vmem:[%s661_s1 + $0x18] sm:$0xff]  ;;  %v176_v43 = vld [vmem:[%s661_s1 + $0x10] sm:$0xff]  ;;  %v190_v47 = vld [vmem:[#allocation6] sm:$0xff] }
  0xa3   :  { %364 = vmatprep.subr.mxu0 %v476_v5  ;;  %v120_v50 = vpop.permute.xlu0 %119  ;;  %v115_v56 = vpop.permute.xlu1 %114 }
  0xa4   :  { %v167_v53 = vmul.f32 %v573_v18, %v120_v50  ;;  %v233_v54 = vadd.f32 %v217_v46, %v185_v51  ;;  %v166_v59 = vmul.f32 %v573_v18, %v115_v56  ;;  %v232_v60 = vadd.f32 %v216_v52, %v184_v57  ;;  %v174_v51 = vld [vmem:[%s661_s1] sm:$0xff] }
  0xa6   :  { %365 = vmatpush3.xpose.msra.mxu0 %v235_v40  ;;  %v215_v58 = vmul.f32 %v199_v55, %v167_v53  ;;  %v214_v0 = vmul.f32 %v198_v61, %v166_v59  ;;  %v342_v53 = vld [vmem:[%s665_s5] ss:$0 sm:$0xff] }
  0xa7   :  { %366 = vmatprep.subr.mxu0 %v476_v5  ;;  %v110_v62 = vpop.permute.xlu0 %109  ;;  %v105_v4 = vpop.permute.xlu1 %104 }
  0xa8   :  { %v165_v1 = vmul.f32 %v573_v18, %v110_v62  ;;  %v231_v2 = vadd.f32 %v215_v58, %v183_v63  ;;  %v164_v8 = vmul.f32 %v573_v18, %v105_v4  ;;  %v230_v9 = vadd.f32 %v214_v0, %v182_v6 }
  0xaa   :  { %367 = vmatpush3.xpose.msra.mxu0 %v234_v48  ;;  %v213_v7 = vmul.f32 %v197_v3, %v165_v1  ;;  %v212_v13 = vmul.f32 %v196_v10, %v164_v8  ;;  %v175_v48 = vld [vmem:[%s661_s1 + $0x8] sm:$0xff] }
  0xab   :  { %368 = vmatprep.subr.mxu0 %v476_v5  ;;  %v100_v11 = vpop.permute.xlu0 %99  ;;  %v95_v17 = vpop.permute.xlu1 %94 }
  0xac   :  { %v163_v14 = vmul.f32 %v573_v18, %v100_v11  ;;  %v229_v15 = vadd.f32 %v213_v7, %v181_v12  ;;  %v162_v21 = vmul.f32 %v573_v18, %v95_v17  ;;  %v228_v22 = vadd.f32 %v212_v13, %v180_v19 }
  0xae   :  { %369 = vmatpush3.xpose.msra.mxu0 %v233_v54  ;;  %v211_v20 = vmul.f32 %v195_v16, %v163_v14  ;;  %v210_v26 = vmul.f32 %v194_v23, %v162_v21 }
  0xaf   :  { %370 = vmatprep.subr.mxu0 %v476_v5  ;;  %v90_v24 = vpop.permute.xlu0 %89  ;;  %v85_v30 = vpop.permute.xlu1 %84 }
  0xb0   :  { %v161_v27 = vmul.f32 %v573_v18, %v90_v24  ;;  %v227_v28 = vadd.f32 %v211_v20, %v179_v25  ;;  %v160_v33 = vmul.f32 %v573_v18, %v85_v30  ;;  %v226_v34 = vadd.f32 %v210_v26, %v178_v31 }
  0xb2   :  { %371 = vmatpush3.xpose.msra.mxu0 %v232_v60  ;;  %v209_v32 = vmul.f32 %v193_v29, %v161_v27  ;;  %v208_v38 = vmul.f32 %v192_v35, %v160_v33 }
  0xb3   :  { %372 = vmatprep.subr.mxu0 %v476_v5  ;;  %v80_v36 = vpop.permute.xlu0 %79  ;;  %v75_v42 = vpop.permute.xlu1 %74 }
  0xb4   :  { %v159_v39 = vmul.f32 %v573_v18, %v80_v36  ;;  %v225_v40 = vadd.f32 %v209_v32, %v177_v37  ;;  %v158_v45 = vmul.f32 %v573_v18, %v75_v42  ;;  %v224_v46 = vadd.f32 %v208_v38, %v176_v43  ;;  %v239_v18 = vld [vmem:[#allocation3] sm:$0xff] }
  0xb6   :  { %373 = vmatpush3.xpose.msra.mxu0 %v231_v2  ;;  %v207_v44 = vmul.f32 %v191_v41, %v159_v39  ;;  %v206_v49 = vmul.f32 %v190_v47, %v158_v45 }
  0xb7   :  { %374 = vmatprep.subr.mxu0 %v476_v5 }
  0xb8   :  { %v223_v50 = vadd.f32 %v207_v44, %v175_v48  ;;  %v222_v52 = vadd.f32 %v206_v49, %v174_v51 }
  0xba   :  { %375 = vmatpush3.xpose.msra.mxu0 %v230_v9 }
  0xbb   :  { %376 = vmatprep.subr.mxu0 %v476_v5 }
  0xbe   :  { %377 = vmatpush3.xpose.msra.mxu0 %v229_v15 }
  0xbf   :  { %378 = vmatprep.subr.mxu0 %v476_v5 }
  0xc2   :  { %379 = vmatpush3.xpose.msra.mxu0 %v228_v22 }
  0xc3   :  { %380 = vmatprep.subr.mxu0 %v476_v5 }
  0xc6   :  { %381 = vmatpush3.xpose.msra.mxu0 %v227_v28 }
  0xc7   :  { %382 = vmatprep.subr.mxu0 %v476_v5 }
  0xca   :  { %383 = vmatpush3.xpose.msra.mxu0 %v226_v34 }
  0xcb   :  { %384 = vmatprep.subr.mxu0 %v476_v5 }
  0xce   :  { %385 = vmatpush3.xpose.msra.mxu0 %v225_v40 }
  0xcf   :  { %386 = vmatprep.subr.mxu0 %v476_v5 }
  0xd2   :  { %387 = vmatpush3.xpose.msra.mxu0 %v224_v46 }
  0xd3   :  { %388 = vmatprep.subr.mxu0 %v476_v5 }
  0xd6   :  { %389 = vmatpush3.xpose.msra.mxu0 %v223_v50 }
  0xd7   :  { %390 = vmatprep.subr.mxu0 %v476_v5 }
  0xda   :  { %391 = vmatpush3.xpose.msra.mxu0 %v222_v52 }
  0xdd   :  { %393 = vmatmul.mubr.f32.vlgmr.msra.gmra.mxu0 %v239_v18 }
 0x19d   :  { %v306_v54 = vpop.f32.mrf.mxu0 }
 0x19e   :  { %v323_v55 = vadd.f32 %v342_v53, %v306_v54 }
 0x19f   :  { %v394_v56 = vpop.f32.mrf.mxu0 }
 0x1a0   :  { %324 = vst [vmem:[#allocation8] sm:$0xff] %v323_v55 }
 0x1a1   :  { %456 = shalt.err (!%p453_p0)
}
 0x1a2   :  { %334 = dma.vmem_to_hbm [thread:$0]  %s332_s20, 128, %s666_s6, [#allocation5]  }
 0x1a3   :  { %469 = dma.done.wait [#allocation5], 128  }
 0x1a4   :  { %470 = vsyncadd [#allocation5], 4294967168 }
 0x1a5   :  { %338 = vsyncpa [#allocation4], 1 }
 0x1a6   :  { %339 = vsyncpa [#allocation7], 1 }
 0x1a7   :  { %340 = vsyncpa [#allocation5], 1 }

</bundles_post_ra>
